<compile_context>
chip_gen: v6e
topology: v6e:2x2x1
jax: 0.10.0
libtpu: 0.0.40
codegen_flags: <defaults>
</compile_context>

<pallas_src>
import functools

import jax
import jax.numpy as jnp
import numpy as np
from jax.experimental import pallas as pl
from jax.experimental.pallas import tpu as pltpu

LN_EPS = 1e-5
MATMUL_DTYPE = jnp.float32  # jnp.bfloat16 enables the fast MXU path on v6e/v7x


def _vmem_limit_bytes():
    """Generation-dependent VMEM budget: ~3/4 of physical, capped at 96 MiB."""
    default = 64 * 1024 * 1024
    try:
        cap = int(getattr(pltpu.get_tpu_info(), "vmem_capacity_bytes", default))
    except Exception:
        cap = default
    return int(min(cap * 3 // 4, 96 * 1024 * 1024))


VMEM_LIMIT_BYTES = _vmem_limit_bytes()
ROW_TILE = 1024 if VMEM_LIMIT_BYTES >= 64 * 1024 * 1024 else 512
Q_TILE = 512  # query-row tile for the attention kernel


def _compiler_params(*sem):
    return pltpu.CompilerParams(
        dimension_semantics=sem, vmem_limit_bytes=VMEM_LIMIT_BYTES
    )


# --------------------------------------------------------------------------
# shared helpers (used inside kernels)
# --------------------------------------------------------------------------
def _mm(a, b):
    """Matmul with optional bf16 operands, always f32 accumulation."""
    return jnp.dot(
        a.astype(MATMUL_DTYPE), b.astype(MATMUL_DTYPE),
        preferred_element_type=jnp.float32,
    )


def _layernorm(x, gamma, beta):
    # x: [M, C], gamma/beta: [1, C]; statistics kept in f32
    mu = jnp.mean(x, axis=-1, keepdims=True)
    xc = x - mu
    var = jnp.mean(xc * xc, axis=-1, keepdims=True)
    return xc * jax.lax.rsqrt(var + LN_EPS) * gamma + beta


def _row_tile(m):
    # full array if small (block == full dim is always legal), else ROW_TILE rows
    return m if m <= ROW_TILE else ROW_TILE


def _q_tile(n):
    return n if n <= Q_TILE else Q_TILE


# --------------------------------------------------------------------------
# Kernel 1: fused Linear -> ReLU -> Linear  (input_proj), tiled over rows
# --------------------------------------------------------------------------
def _mlp2_kernel(x_ref, w1_ref, b1_ref, w2_ref, b2_ref, o_ref):
    h = jnp.maximum(_mm(x_ref[...], w1_ref[...]) + b1_ref[...], 0.0)
    o_ref[...] = _mm(h, w2_ref[...]) + b2_ref[...]


def mlp2(x, w1, b1, w2, b2):
    M, K = x.shape
    H = w1.shape[1]
    O = w2.shape[1]
    TM = _row_tile(M)
    return pl.pallas_call(
        _mlp2_kernel,
        out_shape=jax.ShapeDtypeStruct((M, O), jnp.float32),
        grid=(pl.cdiv(M, TM),),
        in_specs=[
            pl.BlockSpec((TM, K), lambda i: (i, 0)),
            pl.BlockSpec((K, H), lambda i: (0, 0)),
            pl.BlockSpec((1, H), lambda i: (0, 0)),
            pl.BlockSpec((H, O), lambda i: (0, 0)),
            pl.BlockSpec((1, O), lambda i: (0, 0)),
        ],
        out_specs=pl.BlockSpec((TM, O), lambda i: (i, 0)),
        compiler_params=_compiler_params("parallel"),
    )(x, w1, b1, w2, b2)


# --------------------------------------------------------------------------
# Kernel 2: fused LayerNorm -> Linear -> ReLU -> Linear (tail), tiled over
# rows, with a lane-dense (multiple-of-128) padded output projection.
# --------------------------------------------------------------------------
def _ln_mlp2_kernel(x_ref, g_ref, b_ref, w1_ref, b1_ref, w2_ref, b2_ref, o_ref):
    xn = _layernorm(x_ref[...], g_ref[...], b_ref[...])
    h = jnp.maximum(_mm(xn, w1_ref[...]) + b1_ref[...], 0.0)
    o_ref[...] = _mm(h, w2_ref[...]) + b2_ref[...]


def ln_mlp2(x, g, b, w1, b1, w2, b2):
    M, C = x.shape
    H = w1.shape[1]
    O = w2.shape[1]
    # lane-dense output: pad the final projection to a multiple of 128 lanes
    OP = max(128, ((O + 127) // 128) * 128)
    if OP != O:
        w2 = jnp.pad(w2, ((0, 0), (0, OP - O)))
        b2 = jnp.pad(b2, ((0, 0), (0, OP - O)))
    TM = _row_tile(M)
    out = pl.pallas_call(
        _ln_mlp2_kernel,
        out_shape=jax.ShapeDtypeStruct((M, OP), jnp.float32),
        grid=(pl.cdiv(M, TM),),
        in_specs=[
            pl.BlockSpec((TM, C), lambda i: (i, 0)),
            pl.BlockSpec((1, C), lambda i: (0, 0)),
            pl.BlockSpec((1, C), lambda i: (0, 0)),
            pl.BlockSpec((C, H), lambda i: (0, 0)),
            pl.BlockSpec((1, H), lambda i: (0, 0)),
            pl.BlockSpec((H, OP), lambda i: (0, 0)),
            pl.BlockSpec((1, OP), lambda i: (0, 0)),
        ],
        out_specs=pl.BlockSpec((TM, OP), lambda i: (i, 0)),
        compiler_params=_compiler_params("parallel"),
    )(x, g, b, w1, b1, w2, b2)
    return out[:, :O] if OP != O else out


# --------------------------------------------------------------------------
# Kernel 3a (per block): per-token  pos-MLP -> norm1 -> fused QKV projection
#   One [TM,C]x[C,3C] matmul (softmax scale folded into the Q columns);
#   q/k/v are emitted as three lane-dense [M, C] outputs.  Row-tiled grid.
# --------------------------------------------------------------------------
def _qkv_kernel(x_ref, pos_ref, pw1_ref, pb1_ref, pw2_ref, pb2_ref,
                n1g_ref, n1b_ref, wqkv_ref, bqkv_ref,
                q_ref, k_ref, v_ref, *, dim):
    pe = jnp.maximum(_mm(pos_ref[...], pw1_ref[...]) + pb1_ref[...], 0.0)
    pe = _mm(pe, pw2_ref[...]) + pb2_ref[...]
    xn = _layernorm(x_ref[...], n1g_ref[...], n1b_ref[...])
    h = xn + pe
    qkv = _mm(h, wqkv_ref[...]) + bqkv_ref[...]          # [TM, 3C]
    q_ref[...] = qkv[:, :dim]
    k_ref[...] = qkv[:, dim:2 * dim]
    v_ref[...] = qkv[:, 2 * dim:]


def block_qkv(x_flat, pos_flat, p, num_heads):
    M, C = x_flat.shape
    hd = C // num_heads
    scale = hd ** (-0.5)
    # fold the softmax scale into the Q columns of the fused QKV weight/bias
    col_scale = jnp.concatenate(
        [jnp.full((C,), scale, jnp.float32), jnp.ones((2 * C,), jnp.float32)]
    )
    wqkv = p["wqkv"] * col_scale[None, :]
    bqkv = p["bqkv"] * col_scale[None, :]

    TM = _row_tile(M)
    kernel = functools.partial(_qkv_kernel, dim=C)
    out_sd = jax.ShapeDtypeStruct((M, C), jnp.float32)
    q, k, v = pl.pallas_call(
        kernel,
        out_shape=(out_sd, out_sd, out_sd),
        grid=(pl.cdiv(M, TM),),
        in_specs=[
            pl.BlockSpec((TM, C), lambda i: (i, 0)),        # x
            pl.BlockSpec((TM, 3), lambda i: (i, 0)),        # pos
            pl.BlockSpec((3, C), lambda i: (0, 0)),         # pos mlp w1
            pl.BlockSpec((1, C), lambda i: (0, 0)),
            pl.BlockSpec((C, C), lambda i: (0, 0)),         # pos mlp w2
            pl.BlockSpec((1, C), lambda i: (0, 0)),
            pl.BlockSpec((1, C), lambda i: (0, 0)),         # norm1 gamma
            pl.BlockSpec((1, C), lambda i: (0, 0)),         # norm1 beta
            pl.BlockSpec((C, 3 * C), lambda i: (0, 0)),     # fused qkv weight
            pl.BlockSpec((1, 3 * C), lambda i: (0, 0)),     # fused qkv bias
        ],
        out_specs=(
            pl.BlockSpec((TM, C), lambda i: (i, 0)),
            pl.BlockSpec((TM, C), lambda i: (i, 0)),
            pl.BlockSpec((TM, C), lambda i: (i, 0)),
        ),
        compiler_params=_compiler_params("parallel"),
    )(x_flat, pos_flat,
      p["pos_w1"], p["pos_b1"], p["pos_w2"], p["pos_b2"],
      p["n1g"], p["n1b"], wqkv, bqkv)
    return q, k, v


# --------------------------------------------------------------------------
# Kernel 3b (per block): attention (per-head S = QK^T, P@V only) + single
#   [C,C] output projection + residual + norm2 + MLP + residual.
#   Grid = (B, cdiv(N, TQ)); K/V are full-N blocks (re-used across q tiles),
#   q / residual / output are TQ-row tiles, both grid axes "parallel".
# --------------------------------------------------------------------------
def _attn_kernel(q_ref, k_ref, v_ref, x_ref,
                 wp_ref, bp_ref, n2g_ref, n2b_ref,
                 wm1_ref, bm1_ref, wm2_ref, bm2_ref,
                 o_ref, *, num_heads):
    q = q_ref[0]                    # [TQ, C]
    k = k_ref[0]                    # [N, C]
    v = v_ref[0]                    # [N, C]
    C = q.shape[-1]
    hd = C // num_heads

    # TODO(synk): for very large N, switch to a flash-style online-softmax
    # KV-tile loop; the q-tile grid already bounds scores to [TQ, N] per head.
    heads = []
    for hh in range(num_heads):
        qh = q[:, hh * hd:(hh + 1) * hd]
        kh = k[:, hh * hd:(hh + 1) * hd]
        vh = v[:, hh * hd:(hh + 1) * hd]
        # scores: contract head_dim of q and k directly (no explicit transpose)
        s = jax.lax.dot_general(
            qh.astype(MATMUL_DTYPE), kh.astype(MATMUL_DTYPE),
            (((1,), (1,)), ((), ())), preferred_element_type=jnp.float32,
        )                                                   # [TQ, N]
        s = s - jnp.max(s, axis=-1, keepdims=True)
        pr = jnp.exp(s)
        # EUP approx reciprocal + multiply instead of a [TQ, N] divide
        pr = pr * pl.reciprocal(jnp.sum(pr, axis=-1, keepdims=True), approx=True)
        heads.append(_mm(pr, vh))                           # [TQ, hd]

    o = jnp.concatenate(heads, axis=-1)                     # [TQ, C]
    x2 = _mm(o, wp_ref[...]) + bp_ref[...]                  # one full-width proj
    x3 = x_ref[0] + x2                                      # residual

    xn2 = _layernorm(x3, n2g_ref[...], n2b_ref[...])
    m = jnp.maximum(_mm(xn2, wm1_ref[...]) + bm1_ref[...], 0.0)
    m = _mm(m, wm2_ref[...]) + bm2_ref[...]
    o_ref[0] = x3 + m


def block_attn(x, q, k, v, p, num_heads):
    B, N, C = x.shape
    hidden = p["wm1"].shape[1]
    TQ = _q_tile(N)

    def fullb(shape):
        nd = len(shape)
        # TODO(synk): pipeline_mode=pl.Buffered(1) here would halve the VMEM
        # footprint of these constant-index weight blocks (helps v7x most).
        return pl.BlockSpec(shape, lambda b, i: (0,) * nd)

    kernel = functools.partial(_attn_kernel, num_heads=num_heads)
    return pl.pallas_call(
        kernel,
        out_shape=jax.ShapeDtypeStruct((B, N, C), jnp.float32),
        grid=(B, pl.cdiv(N, TQ)),
        in_specs=[
            pl.BlockSpec((1, TQ, C), lambda b, i: (b, i, 0)),   # q tile
            pl.BlockSpec((1, N, C), lambda b, i: (b, 0, 0)),    # k (full N)
            pl.BlockSpec((1, N, C), lambda b, i: (b, 0, 0)),    # v (full N)
            pl.BlockSpec((1, TQ, C), lambda b, i: (b, i, 0)),   # residual tile
            fullb((C, C)), fullb((1, C)),                       # proj
            fullb((1, C)), fullb((1, C)),                       # norm2
            fullb((C, hidden)), fullb((1, hidden)),             # mlp fc1
            fullb((hidden, C)), fullb((1, C)),                  # mlp fc2
        ],
        out_specs=pl.BlockSpec((1, TQ, C), lambda b, i: (b, i, 0)),
        compiler_params=_compiler_params("parallel", "parallel"),
    )(q, k, v, x,
      p["wproj"], p["bproj"], p["n2g"], p["n2b"],
      p["wm1"], p["bm1"], p["wm2"], p["bm2"])


def transformer_block(x, pos, p, num_heads):
    B, N, C = x.shape
    q, k, v = block_qkv(x.reshape(B * N, C), pos.reshape(B * N, 3), p, num_heads)
    q = q.reshape(B, N, C)
    k = k.reshape(B, N, C)
    v = v.reshape(B, N, C)
    return block_attn(x, q, k, v, p, num_heads)


# --------------------------------------------------------------------------
# Parameter init (deterministic, synthetic; torch-like layout)
# --------------------------------------------------------------------------
def init_params(key, input_dim, embed_dim, output_dim, num_layers, mlp_ratio=4.0):
    keys = iter(jax.random.split(key, 512))

    def lin(in_f, out_f):
        w = jax.random.normal(next(keys), (in_f, out_f), jnp.float32) * 0.02
        b = jax.random.normal(next(keys), (1, out_f), jnp.float32) * 0.01
        return w, b

    hidden = int(embed_dim * mlp_ratio)
    params = {}
    params["in_w1"], params["in_b1"] = lin(input_dim, embed_dim)
    params["in_w2"], params["in_b2"] = lin(embed_dim, embed_dim)

    blocks = []
    for _ in range(num_layers):
        p = {}
        p["pos_w1"], p["pos_b1"] = lin(3, embed_dim)
        p["pos_w2"], p["pos_b2"] = lin(embed_dim, embed_dim)
        p["n1g"] = jnp.ones((1, embed_dim), jnp.float32)
        p["n1b"] = jnp.zeros((1, embed_dim), jnp.float32)
        p["wqkv"], p["bqkv"] = lin(embed_dim, 3 * embed_dim)
        p["wproj"], p["bproj"] = lin(embed_dim, embed_dim)
        p["n2g"] = jnp.ones((1, embed_dim), jnp.float32)
        p["n2b"] = jnp.zeros((1, embed_dim), jnp.float32)
        p["wm1"], p["bm1"] = lin(embed_dim, hidden)
        p["wm2"], p["bm2"] = lin(hidden, embed_dim)
        blocks.append(p)
    params["blocks"] = blocks

    params["norm_g"] = jnp.ones((1, embed_dim), jnp.float32)
    params["norm_b"] = jnp.zeros((1, embed_dim), jnp.float32)
    params["out_w1"], params["out_b1"] = lin(embed_dim, embed_dim)
    params["out_w2"], params["out_b2"] = lin(embed_dim, output_dim)
    return params


# --------------------------------------------------------------------------
# Full forward (Pallas kernels for all compute; reshapes are glue)
# --------------------------------------------------------------------------
def point_transformer_v3(points, params, num_heads):
    B, N, D = points.shape
    C = params["in_w2"].shape[1]
    pos = points[:, :, :3]

    x = mlp2(points.reshape(B * N, D),
             params["in_w1"], params["in_b1"], params["in_w2"], params["in_b2"])
    x = x.reshape(B, N, C)

    for p in params["blocks"]:
        x = transformer_block(x, pos, p, num_heads)

    out = ln_mlp2(x.reshape(B * N, C),
                  params["norm_g"], params["norm_b"],
                  params["out_w1"], params["out_b1"],
                  params["out_w2"], params["out_b2"])
    return out.reshape(B, N, -1)


# --------------------------------------------------------------------------
# Pure-JAX reference (mirrors the PyTorch forward, eval mode) for validation
# --------------------------------------------------------------------------
def _ref_ln(x, g, b):
    mu = jnp.mean(x, axis=-1, keepdims=True)
    var = jnp.mean((x - mu) ** 2, axis=-1, keepdims=True)
    return (x - mu) / jnp.sqrt(var + LN_EPS) * g + b


def reference_forward(points, params, num_heads):
    B, N, _ = points.shape
    C = params["in_w2"].shape[1]
    hd = C // num_heads
    pos = points[:, :, :3]

    x = jnp.maximum(points @ params["in_w1"] + params["in_b1"], 0.0)
    x = x @ params["in_w2"] + params["in_b2"]

    for p in params["blocks"]:
        pe = jnp.maximum(pos @ p["pos_w1"] + p["pos_b1"], 0.0)
        pe = pe @ p["pos_w2"] + p["pos_b2"]
        shortcut = x
        xn = _ref_ln(x, p["n1g"], p["n1b"])
        qkv = (xn + pe) @ p["wqkv"] + p["bqkv"]                 # [B, N, 3C]
        qkv = qkv.reshape(B, N, 3, num_heads, hd).transpose(2, 0, 3, 1, 4)
        q, k, v = qkv[0], qkv[1], qkv[2]                        # [B, H, N, hd]
        attn = (q @ jnp.swapaxes(k, -2, -1)) * (hd ** -0.5)
        attn = jax.nn.softmax(attn, axis=-1)
        o = (attn @ v).transpose(0, 2, 1, 3).reshape(B, N, C)
        x = shortcut + (o @ p["wproj"] + p["bproj"])
        xn2 = _ref_ln(x, p["n2g"], p["n2b"])
        m = jnp.maximum(xn2 @ p["wm1"] + p["bm1"], 0.0)
        x = x + (m @ p["wm2"] + p["bm2"])

    x = _ref_ln(x, params["norm_g"], params["norm_b"])
    x = jnp.maximum(x @ params["out_w1"] + params["out_b1"], 0.0)
    return x @ params["out_w2"] + params["out_b2"]


# --------------------------------------------------------------------------
if __name__ == "__main__":
    B, N = 2, 8
    INPUT_DIM, EMBED_DIM, OUTPUT_DIM = 6, 32, 64
    NUM_HEADS, NUM_LAYERS = 4, 2

    key = jax.random.PRNGKey(0)
    k_pts, k_par = jax.random.split(key)
    points = jax.random.normal(k_pts, (B, N, INPUT_DIM), jnp.float32)
    params = init_params(k_par, INPUT_DIM, EMBED_DIM, OUTPUT_DIM, NUM_LAYERS)

    out = point_transformer_v3(points, params, NUM_HEADS)
    out = jax.block_until_ready(out)

    ref = jax.block_until_ready(reference_forward(points, params, NUM_HEADS))
    # slightly relaxed vs 1e-3 to absorb the approx-reciprocal softmax path
    np.testing.assert_allclose(np.asarray(out), np.asarray(ref), rtol=2e-3, atol=2e-3)
    assert out.shape == (B, N, OUTPUT_DIM)

    print("KERNEL_OK")
</pallas_src>

<mosaic_0001>
module attributes {stable_mosaic.version = 11 : i64} {
  func.func @_mlp2_kernel(%arg0: i32, %arg1: memref<16x6xf32, #tpu.memory_space<vmem>>, %arg2: memref<6x32xf32, #tpu.memory_space<vmem>>, %arg3: memref<1x32xf32, #tpu.memory_space<vmem>>, %arg4: memref<32x32xf32, #tpu.memory_space<vmem>>, %arg5: memref<1x32xf32, #tpu.memory_space<vmem>>, %arg6: memref<16x32xf32, #tpu.memory_space<vmem>>) attributes {dimension_semantics = [#tpu.dimension_semantics<parallel>], iteration_bounds = array<i64: 1>, scalar_prefetch = 0 : i64, scratch_operands = 0 : i64, tpu.core_type = #tpu.core_type<tc>, window_params = [{transform_indices = @transform_0, window_bounds = array<i64: 16, 6>}, {pipeline_mode = #tpu.pipeline_mode<synchronous>, transform_indices = @transform_1, window_bounds = array<i64: 6, 32>}, {pipeline_mode = #tpu.pipeline_mode<synchronous>, transform_indices = @transform_2, window_bounds = array<i64: 1, 32>}, {pipeline_mode = #tpu.pipeline_mode<synchronous>, transform_indices = @transform_3, window_bounds = array<i64: 32, 32>}, {pipeline_mode = #tpu.pipeline_mode<synchronous>, transform_indices = @transform_4, window_bounds = array<i64: 1, 32>}, {transform_indices = @transform_5, window_bounds = array<i64: 16, 32>}]} {
    %c0 = arith.constant 0 : index
    %c0_0 = arith.constant 0 : index
    %0 = vector.load %arg1[%c0, %c0_0] : memref<16x6xf32, #tpu.memory_space<vmem>>, vector<16x6xf32>
    %c0_1 = arith.constant 0 : index
    %c0_2 = arith.constant 0 : index
    %1 = vector.load %arg2[%c0_1, %c0_2] : memref<6x32xf32, #tpu.memory_space<vmem>>, vector<6x32xf32>
    %cst = arith.constant dense<0.000000e+00> : vector<16x32xf32>
    %2 = tpu.matmul %0, %1, %cst {dimension_numbers = #tpu.dot_dimension_numbers<[1], [0], [0], [1], [0, 0, 1, 1], [], []>} : vector<16x6xf32>, vector<6x32xf32>, vector<16x32xf32> -> vector<16x32xf32>
    %c0_3 = arith.constant 0 : index
    %c0_4 = arith.constant 0 : index
    %3 = vector.load %arg3[%c0_3, %c0_4] : memref<1x32xf32, #tpu.memory_space<vmem>>, vector<1x32xf32>
    %4 = vector.broadcast %3 : vector<1x32xf32> to vector<16x32xf32>
    %5 = arith.addf %2, %4 : vector<16x32xf32>
    %cst_5 = arith.constant 0.000000e+00 : f32
    %6 = vector.broadcast %cst_5 : f32 to vector<16x32xf32>
    %7 = arith.maximumf %5, %6 : vector<16x32xf32>
    %c0_6 = arith.constant 0 : index
    %c0_7 = arith.constant 0 : index
    %8 = vector.load %arg4[%c0_6, %c0_7] : memref<32x32xf32, #tpu.memory_space<vmem>>, vector<32x32xf32>
    %cst_8 = arith.constant dense<0.000000e+00> : vector<16x32xf32>
    %9 = tpu.matmul %7, %8, %cst_8 {dimension_numbers = #tpu.dot_dimension_numbers<[1], [0], [0], [1], [0, 0, 1, 1], [], []>} : vector<16x32xf32>, vector<32x32xf32>, vector<16x32xf32> -> vector<16x32xf32>
    %c0_9 = arith.constant 0 : index
    %c0_10 = arith.constant 0 : index
    %10 = vector.load %arg5[%c0_9, %c0_10] : memref<1x32xf32, #tpu.memory_space<vmem>>, vector<1x32xf32>
    %11 = vector.broadcast %10 : vector<1x32xf32> to vector<16x32xf32>
    %12 = arith.addf %9, %11 : vector<16x32xf32>
    %c0_11 = arith.constant 0 : index
    %c0_12 = arith.constant 0 : index
    %13 = vector.load %arg6[%c0_11, %c0_12] : memref<16x32xf32, #tpu.memory_space<vmem>>, vector<16x32xf32>
    tpu.vector_store %arg6[%c0_11, %c0_12], %12 {strides = array<i32>} : memref<16x32xf32, #tpu.memory_space<vmem>>, vector<16x32xf32>,
    return
  }
  func.func @transform_0(%arg0: i32) -> (i32, i32) {
    %c0_i32 = arith.constant 0 : i32
    %c0_i32_0 = arith.constant 0 : i32
    return %arg0, %c0_i32 : i32, i32
  }
  func.func @transform_1(%arg0: i32) -> (i32, i32) {
    %c0_i32 = arith.constant 0 : i32
    %c0_i32_0 = arith.constant 0 : i32
    %c0_i32_1 = arith.constant 0 : i32
    return %c0_i32, %c0_i32_0 : i32, i32
  }
  func.func @transform_2(%arg0: i32) -> (i32, i32) {
    %c0_i32 = arith.constant 0 : i32
    %c0_i32_0 = arith.constant 0 : i32
    %c0_i32_1 = arith.constant 0 : i32
    return %c0_i32, %c0_i32_0 : i32, i32
  }
  func.func @transform_3(%arg0: i32) -> (i32, i32) {
    %c0_i32 = arith.constant 0 : i32
    %c0_i32_0 = arith.constant 0 : i32
    %c0_i32_1 = arith.constant 0 : i32
    return %c0_i32, %c0_i32_0 : i32, i32
  }
  func.func @transform_4(%arg0: i32) -> (i32, i32) {
    %c0_i32 = arith.constant 0 : i32
    %c0_i32_0 = arith.constant 0 : i32
    %c0_i32_1 = arith.constant 0 : i32
    return %c0_i32, %c0_i32_0 : i32, i32
  }
  func.func @transform_5(%arg0: i32) -> (i32, i32) {
    %c0_i32 = arith.constant 0 : i32
    %c0_i32_0 = arith.constant 0 : i32
    return %arg0, %c0_i32 : i32, i32
  }
}

</mosaic_0001>

<bundles_post_ra>
// kernel: tpu_custom_call.1
= control target key start
LH: loop header
LB: loop body
LE: loop exit
PB: predicated region body
PF: predicated region fallthrough
CT: control target
= control target key end

     0   :  { %10 = vsyncpa [#allocation3], 0  ;;  %s386_s0 = inlined_call_operand.vmem [shape: f32[16,6], index: 0, kind: input, shape index: {}]   ;;  %s387_s1 = inlined_call_operand.vmem [shape: f32[6,32], index: 1, kind: input, shape index: {}]   ;;  %s388_s2 = inlined_call_operand.vmem [shape: f32[1,32], index: 2, kind: input, shape index: {}]   ;;  %s389_s3 = inlined_call_operand.hbm [shape: f32[32,32], index: 3, kind: input, shape index: {}]   ;;  %s390_s4 = inlined_call_operand.vmem [shape: f32[1,32], index: 4, kind: input, shape index: {}]   ;;  %s391_s5 = inlined_call_operand.hbm [shape: f32[16,32], index: 5, kind: output, shape index: {}]  }
   0x1   :  { %11 = vsyncpa [#allocation4], 0  ;;  %s325_s18 = smov [#allocation2]  }
   0x2   :  { %s23_s19 = sshll.u32 %s325_s18, 4  ;;  %s24_s19 = int_to_ptr.vmem [resolvable:$true] %s23_s19 }
   0x3   :  { %s289_s20 = scalar_lea.vmem %s24_s19, 512  ;;  %p294_p1 = scmp.lt.s32.totalorder %s24_s19, %s24_s19 }
   0x4   :  { %p290_p0 = scmp.ne.s32.totalorder %s24_s19, %s289_s20  ;;  %p295_p2 = scmp.lt.s32.totalorder %s289_s20, %s289_s20 }
   0x6   :  { %p296_p3 = por %p295_p2, %p294_p1 }
   0x8   :  { %p297_p4 = pnand %p296_p3, %p290_p0 }
   0xa   :  { %300 = shalt.err (!%p297_p4)
}
   0xb   :  { %s326_s21 = smov 128   ;;  %s327_s22 = smov 8  }
   0xc   :  { %29 = dma.hbm_to_vmem [thread:$0]  %s389_s3, 512, %s24_s19, [#allocation3], %s326_s21, %s326_s21, %s327_s22  }
   0xd   :  { %321 = dma.done.wait [#allocation3], 512  }
   0xe   :  { %322 = vsyncadd [#allocation3], 4294966784  ;;  %vm52_vm0 = vcmask 1045504   ;;  %vm45_vm1 = vcmask 48128   ;;  %v37_v0 = vld [vmem:[%s387_s1] sm:$0x3f] }
   0xf   :  { %v35_v1 = vld [vmem:[%s386_s0] sm:$0xff]  ;;  %v36_v2 = vld [vmem:[%s386_s0 + $0x8] sm:$0xff]  ;;  %261 = vmatprep.subr.msk.mxu0 %vm52_vm0, %v37_v0  ;;  %v136_v3 = vld [vmem:[#allocation2 + $0x18] sm:$0xff]  ;;  %vm144_vm2 = vcmask 261120   ;;  %s328_s7 = smov [#allocation5]  }
  0x10   :  { %263 = vmatprep.mubr.msk.f32.mxu0 %vm45_vm1, %v35_v1  ;;  %262 = vmatpush3.msk.msra.mxu0 %vm52_vm0, %v37_v0  ;;  %v135_v4 = vld [vmem:[#allocation2 + $0x10] sm:$0xff]  ;;  %v134_v5 = vld [vmem:[#allocation2 + $0x8] sm:$0xff]  ;;  %v133_v6 = vld [vmem:[#allocation2] sm:$0xff]  ;;  %s233_s8 = sshll.u32 %s328_s7, 4  ;;  %s234_s8 = int_to_ptr.vmem [resolvable:$true] %s233_s8 }
  0x11   :  { %264 = vmatmul.mubr.msk.f32.vlgmr.msra.gmra.mxu0 %vm45_vm1, %v36_v2  ;;  %266 = vmatprep.subr.mxu1 %v136_v3  ;;  %v245_v7 = vld [vmem:[%s388_s2] ss:$0 sm:$0xff]  ;;  %s301_s2 = scalar_lea.vmem %s234_s8, 256  ;;  %p306_p6 = scmp.lt.s32.totalorder %s234_s8, %s234_s8 }
  0x12   :  { %267 = vmatpush3.msra.mxu1 %v136_v3  ;;  %v249_v14 = vld [vmem:[%s390_s4] ss:$0 sm:$0xff]  ;;  %p302_p5 = scmp.ne.s32.totalorder %s234_s8, %s301_s2  ;;  %p307_p7 = scmp.lt.s32.totalorder %s301_s2, %s301_s2 }
  0x13   :  { %268 = vmatprep.subr.mxu1 %v135_v4 }
  0x14   :  { %269 = vmatpush3.msra.mxu1 %v135_v4  ;;  %p308_p8 = por %p307_p7, %p306_p6 }
  0x15   :  { %270 = vmatprep.subr.mxu1 %v134_v5 }
  0x16   :  { %271 = vmatpush3.msra.mxu1 %v134_v5  ;;  %p309_p9 = pnand %p308_p8, %p302_p5 }
  0x17   :  { %272 = vmatprep.subr.mxu1 %v133_v6 }
  0x18   :  { %273 = vmatpush3.msra.mxu1 %v133_v6 }
  0xd1   :  { %v265_v8 = vpop.f32.mrf.mxu0 }
  0xd2   :  { %v128_v9 = vadd.f32 %v265_v8, %v245_v7 }
  0xd3   :  { %v122_v10 = vpop.f32.mrf.mxu0 }
  0xd4   :  { %v123_v11 = vadd.f32 %v245_v7, %v122_v10  ;;  %v132_v13 = vmax.f32 %v128_v9, 0.0 }
  0xd6   :  { %v131_v12 = vmax.f32 %v123_v11, 0.0 }
  0xd8   :  { %274 = vmatprep.mubr.msk.f32.mxu1 %vm144_vm2, %v131_v12 }
  0xd9   :  { %275 = vmatmul.mubr.msk.f32.vlgmr.msra.gmra.mxu1 %vm144_vm2, %v132_v13 }
 0x199   :  { %v276_v15 = vpop.f32.mrf.mxu1 }
 0x19a   :  { %v223_v16 = vadd.f32 %v276_v15, %v249_v14 }
 0x19b   :  { %v217_v17 = vpop.f32.mrf.mxu1 }
 0x19c   :  { %227 = vst.msk [vmem:[#allocation5 + $0x8] sm:$0xff] %vm144_vm2, %v223_v16  ;;  %v218_v18 = vadd.f32 %v249_v14, %v217_v17 }
 0x19e   :  { %226 = vst.msk [vmem:[#allocation5] sm:$0xff] %vm144_vm2, %v218_v18 }
 0x19f   :  { %312 = shalt.err (!%p309_p9)
}
 0x1a0   :  { %239 = dma.vmem_to_hbm [thread:$0]  %s234_s8, 256, %s391_s5, [#allocation4], %s326_s21, %s326_s21, %s327_s22  }
 0x1a1   :  { %323 = dma.done.wait [#allocation4], 256  }
 0x1a2   :  { %324 = vsyncadd [#allocation4], 4294967040 }
 0x1a3   :  { %243 = vsyncpa [#allocation3], 1 }
 0x1a4   :  { %244 = vsyncpa [#allocation4], 1 }

</bundles_post_ra>
